<compile_context>
chip_gen: v6e
topology: v6e:2x2x1
jax: 0.10.0
libtpu: 0.0.40
codegen_flags: <defaults>
</compile_context>

<pallas_src>
import numpy as np
import jax
import jax.numpy as jnp
from jax.experimental import pallas as pl
from jax.experimental.pallas import tpu as pltpu


# ----------------------------------------------------------------------------
# Parameter construction (host-side glue, mirrors init_kernels(..., invers=True))
# ----------------------------------------------------------------------------
def init_kernels_np(win_len, win_inc, fft_len, win_type="hamming", invers=False):
    if win_type is None or win_type == "None":
        window = np.ones(win_len, dtype=np.float64)
    else:
        n = np.arange(win_len)
        if win_type == "hamming":
            window = 0.54 - 0.46 * np.cos(2.0 * np.pi * n / win_len)   # periodic
        elif win_type in ("hann", "hanning"):
            window = 0.5 - 0.5 * np.cos(2.0 * np.pi * n / win_len)     # periodic
        else:
            raise ValueError(f"unsupported win_type {win_type}")
        window = window ** 0.5
    N = fft_len
    fourier_basis = np.fft.rfft(np.eye(N))[:win_len]                   # (win_len, N//2+1)
    real_kernel = np.real(fourier_basis)
    imag_kernel = np.imag(fourier_basis)
    kernel = np.concatenate([real_kernel, imag_kernel], 1).T           # (N+2, win_len)
    if invers:
        kernel = np.linalg.pinv(kernel).T                              # (N+2, win_len)
    kernel = kernel * window
    kernel = kernel[:, None, :]                                        # (N+2, 1, win_len)
    return kernel.astype(np.float32), window[None, :, None].astype(np.float32)


# ----------------------------------------------------------------------------
# Pallas kernel: frame synthesis (MXU) + fold overlap-add (VPU) + normalise
# ----------------------------------------------------------------------------
def _make_istft_kernel(win_inc, num_phases, num_frames):
    R, T = num_phases, num_frames

    def kernel(spec_ref, w_ref, inv_ref, out_ref, acc_ref):
        # spec_ref: (1, C, T)         spectra, native NCT layout (bf16 or f32)
        # w_ref:    (R*win_inc, C)    transposed (padded) pinv-basis * sqrt(window)
        # inv_ref:  (win_inc, M)      1 / (overlap-added window**2 + 1e-8), M = T+R-1
        # out_ref:  (1, win_inc, M)   blocked/transposed time-domain signal
        # acc_ref:  (win_inc, M)      f32 VMEM scratch accumulator
        #
        # Frame synthesis: single MXU matmul, frames land in (win_len, T) layout
        # so the T (frame) axis is the lane-dense axis everywhere downstream.
        frames_t = jnp.dot(w_ref[...], spec_ref[0],
                           preferred_element_type=jnp.float32)         # (R*win_inc, T)

        # Fold overlap-add: out[(t+p)*win_inc + q] += frames[t, p*win_inc + q]
        # => acc[q, m] = sum_p frames_t[p*win_inc + q, m - p]
        acc_ref[...] = jnp.zeros_like(acc_ref)
        for p in range(R):          # R = ceil(win_len / win_inc): small & static (2..4)
            acc_ref[:, p:p + T] += frames_t[p * win_inc:(p + 1) * win_inc, :]

        # Window normalisation: precomputed reciprocal -> one VPU multiply.
        out_ref[...] = (acc_ref[...] * inv_ref[...])[None]

    return kernel


# ----------------------------------------------------------------------------
# Wrapper (matches ConviSTFT.forward semantics)
# ----------------------------------------------------------------------------
def conv_istft_forward(inputs, weight, window, win_inc, phase=None,
                       compute_dtype=jnp.bfloat16):
    """Pallas ConviSTFT.forward.

    inputs: [B, fft_len+2, T] (or [B, fft_len//2+1, T] if `phase` is given), NCT.
    weight: (fft_len+2, 1, win_len); window: (1, win_len, 1).
    Returns [B, 1, L] with L = (T-1)*win_inc + win_len.
    """
    if phase is not None:
        real = inputs * jnp.cos(phase)
        imag = inputs * jnp.sin(phase)
        inputs = jnp.concatenate([real, imag], axis=1)

    B, C, T = inputs.shape
    Cw, _, win_len = weight.shape
    assert Cw == C, (Cw, C)

    R = -(-win_len // win_inc)            # phases per output block
    win_pad = R * win_inc                 # win_len padded up to a multiple of win_inc
    M = T + R - 1                         # number of win_inc-sized output blocks
    L = (T - 1) * win_inc + win_len       # true output length

    # Synthesis basis, pre-transposed (and zero-padded) on the host:
    #   w_t[p*win_inc + q, c] = weight[c, 0, p*win_inc + q]
    w_t = jnp.zeros((win_pad, C), jnp.float32).at[:win_len, :].set(
        jnp.transpose(weight[:, 0, :].astype(jnp.float32)))

    # Input-independent window normaliser (== conv_transpose1d(window**2, eye)),
    # stored blocked/transposed and inverted so the kernel only multiplies.
    w2_ph = jnp.zeros((win_pad,), jnp.float32).at[:win_len].set(
        window[0, :, 0].astype(jnp.float32) ** 2).reshape(R, win_inc)
    coff_t = jnp.zeros((win_inc, M), jnp.float32)
    for p in range(R):
        coff_t = coff_t.at[:, p:p + T].add(w2_ph[p][:, None])
    inv_coff_t = 1.0 / (coff_t + 1e-8)

    spec = inputs.astype(compute_dtype)          # native NCT layout, no transpose
    w_t = w_t.astype(compute_dtype)

    kernel = _make_istft_kernel(win_inc, R, T)
    out_blocked = pl.pallas_call(
        kernel,
        out_shape=jax.ShapeDtypeStruct((B, win_inc, M), jnp.float32),
        grid=(B,),
        in_specs=[
            pl.BlockSpec((1, C, T), lambda b: (b, 0, 0)),
            pl.BlockSpec((win_pad, C), lambda b: (0, 0)),     # weight stays resident
            pl.BlockSpec((win_inc, M), lambda b: (0, 0)),     # normaliser stays resident
        ],
        out_specs=pl.BlockSpec((1, win_inc, M), lambda b: (b, 0, 0)),
        scratch_shapes=[pltpu.VMEM((win_inc, M), jnp.float32)],
        compiler_params=pltpu.CompilerParams(dimension_semantics=("parallel",)),
    )(spec, w_t, inv_coff_t)

    # TODO(synk): for very long signals / B==1 on v7x, add a second "parallel"
    # grid axis over frame blocks (with an (R-1)-frame output halo) so work
    # shards across both TensorCores and per-step VMEM stays bounded.

    # Layout plumbing only: (B, win_inc, M) -> (B, M, win_inc) -> (B, 1, M*win_inc).
    out = jnp.transpose(out_blocked, (0, 2, 1)).reshape(B, 1, M * win_inc)
    return out[:, :, :L]


# ----------------------------------------------------------------------------
# Pure numpy reference (float64, mirrors the PyTorch module exactly)
# ----------------------------------------------------------------------------
def reference_istft(inputs, weight, window, stride):
    inputs = np.asarray(inputs, np.float64)
    B, C, T = inputs.shape
    _, _, win_len = weight.shape
    L = (T - 1) * stride + win_len
    out = np.zeros((B, 1, L), np.float64)
    wmat = np.asarray(weight[:, 0, :], np.float64)                     # (C, WIN)
    for b in range(B):
        frames = inputs[b].T @ wmat                                    # (T, WIN)
        for t in range(T):
            out[b, 0, t * stride:t * stride + win_len] += frames[t]
    coff = np.zeros((1, 1, L), np.float64)
    w2 = np.asarray(window[0, :, 0], np.float64) ** 2
    for t in range(T):
        coff[0, 0, t * stride:t * stride + win_len] += w2
    return out / (coff + 1e-8)


if __name__ == "__main__":
    # Small ConviSTFT configuration (win_len % win_inc == 0, 50% overlap).
    win_len, win_inc, fft_len = 16, 8, 16
    kernel_np, window_np = init_kernels_np(win_len, win_inc, fft_len,
                                           win_type="hamming", invers=True)
    # kernel_np: (fft_len+2, 1, win_len) = (18, 1, 16); window_np: (1, 16, 1)

    B, C, T = 2, fft_len + 2, 8
    key = jax.random.PRNGKey(0)
    inputs = jax.random.normal(key, (B, C, T), dtype=jnp.float32)      # [B, N+2, T]

    weight = jnp.asarray(kernel_np)
    window = jnp.asarray(window_np)
    ref = reference_istft(np.asarray(inputs), kernel_np, window_np, win_inc)

    # f32 path: tight check against the float64 reference.
    out_f32 = jax.block_until_ready(
        conv_istft_forward(inputs, weight, window, win_inc,
                           compute_dtype=jnp.float32))
    assert out_f32.shape == ref.shape, (out_f32.shape, ref.shape)
    np.testing.assert_allclose(np.asarray(out_f32), ref, rtol=1e-4, atol=1e-4)

    # bf16-operand path (f32 accumulation on the MXU): the fast path.
    out_bf16 = jax.block_until_ready(
        conv_istft_forward(inputs, weight, window, win_inc,
                           compute_dtype=jnp.bfloat16))
    np.testing.assert_allclose(np.asarray(out_bf16), ref, rtol=3e-2, atol=3e-2)

    print("KERNEL_OK")
</pallas_src>

<mosaic_0001>
module attributes {stable_mosaic.version = 11 : i64} {
  func.func @kernel(%arg0: i32, %arg1: memref<1x18x8xf32, #tpu.memory_space<vmem>>, %arg2: memref<16x18xf32, #tpu.memory_space<vmem>>, %arg3: memref<8x9xf32, #tpu.memory_space<vmem>>, %arg4: memref<1x8x9xf32, #tpu.memory_space<vmem>>, %arg5: memref<8x9xf32, #tpu.memory_space<vmem>>) attributes {dimension_semantics = [#tpu.dimension_semantics<parallel>], iteration_bounds = array<i64: 2>, scalar_prefetch = 0 : i64, scratch_operands = 1 : i64, tpu.core_type = #tpu.core_type<tc>, window_params = [{transform_indices = @transform_0, window_bounds = array<i64: 1, 18, 8>}, {pipeline_mode = #tpu.pipeline_mode<synchronous>, transform_indices = @transform_1, window_bounds = array<i64: 16, 18>}, {pipeline_mode = #tpu.pipeline_mode<synchronous>, transform_indices = @transform_2, window_bounds = array<i64: 8, 9>}, {transform_indices = @transform_3, window_bounds = array<i64: 1, 8, 9>}]} {
    %c0 = arith.constant 0 : index
    %c0_0 = arith.constant 0 : index
    %0 = vector.load %arg2[%c0, %c0_0] : memref<16x18xf32, #tpu.memory_space<vmem>>, vector<16x18xf32>
    %c0_1 = arith.constant 0 : index
    %c0_2 = arith.constant 0 : index
    %c0_3 = arith.constant 0 : index
    %1 = vector.load %arg1[%c0_1, %c0_2, %c0_3] : memref<1x18x8xf32, #tpu.memory_space<vmem>>, vector<1x18x8xf32>
    %2 = vector.shape_cast %1 : vector<1x18x8xf32> to vector<18x8xf32>
    %cst = arith.constant dense<0.000000e+00> : vector<16x8xf32>
    %3 = tpu.matmul %0, %2, %cst {dimension_numbers = #tpu.dot_dimension_numbers<[1], [0], [0], [1], [0, 0, 1, 1], [], []>} : vector<16x18xf32>, vector<18x8xf32>, vector<16x8xf32> -> vector<16x8xf32>
    %cst_4 = arith.constant 0.000000e+00 : f32
    %4 = vector.broadcast %cst_4 : f32 to vector<8x9xf32>
    %c0_5 = arith.constant 0 : index
    %c0_6 = arith.constant 0 : index
    %5 = vector.load %arg5[%c0_5, %c0_6] : memref<8x9xf32, #tpu.memory_space<vmem>>, vector<8x9xf32>
    tpu.vector_store %arg5[%c0_5, %c0_6], %4 {strides = array<i32>} : memref<8x9xf32, #tpu.memory_space<vmem>>, vector<8x9xf32>,
    %c0_7 = arith.constant 0 : index
    %c0_8 = arith.constant 0 : index
    %6 = vector.load %arg5[%c0_7, %c0_8] : memref<8x9xf32, #tpu.memory_space<vmem>>, vector<8x8xf32>
    %7 = vector.extract_strided_slice %3 {offsets = [0, 0], sizes = [8, 8], strides = [1, 1]} : vector<16x8xf32> to vector<8x8xf32>
    %8 = arith.addf %6, %7 : vector<8x8xf32>
    %c0_9 = arith.constant 0 : index
    %c0_10 = arith.constant 0 : index
    %9 = vector.load %arg5[%c0_9, %c0_10] : memref<8x9xf32, #tpu.memory_space<vmem>>, vector<8x8xf32>
    tpu.vector_store %arg5[%c0_9, %c0_10], %8 {strides = array<i32>} : memref<8x9xf32, #tpu.memory_space<vmem>>, vector<8x8xf32>,
    %c0_11 = arith.constant 0 : index
    %c1 = arith.constant 1 : index
    %10 = vector.load %arg5[%c0_11, %c1] : memref<8x9xf32, #tpu.memory_space<vmem>>, vector<8x8xf32>
    %11 = vector.extract_strided_slice %3 {offsets = [8, 0], sizes = [8, 8], strides = [1, 1]} : vector<16x8xf32> to vector<8x8xf32>
    %12 = arith.addf %10, %11 : vector<8x8xf32>
    %c0_12 = arith.constant 0 : index
    %c1_13 = arith.constant 1 : index
    %13 = vector.load %arg5[%c0_12, %c1_13] : memref<8x9xf32, #tpu.memory_space<vmem>>, vector<8x8xf32>
    tpu.vector_store %arg5[%c0_12, %c1_13], %12 {strides = array<i32>} : memref<8x9xf32, #tpu.memory_space<vmem>>, vector<8x8xf32>,
    %c0_14 = arith.constant 0 : index
    %c0_15 = arith.constant 0 : index
    %14 = vector.load %arg5[%c0_14, %c0_15] : memref<8x9xf32, #tpu.memory_space<vmem>>, vector<8x9xf32>
    %c0_16 = arith.constant 0 : index
    %c0_17 = arith.constant 0 : index
    %15 = vector.load %arg3[%c0_16, %c0_17] : memref<8x9xf32, #tpu.memory_space<vmem>>, vector<8x9xf32>
    %16 = arith.mulf %14, %15 : vector<8x9xf32>
    %17 = vector.shape_cast %16 : vector<8x9xf32> to vector<1x8x9xf32>
    %c0_18 = arith.constant 0 : index
    %c0_19 = arith.constant 0 : index
    %c0_20 = arith.constant 0 : index
    %18 = vector.load %arg4[%c0_18, %c0_19, %c0_20] : memref<1x8x9xf32, #tpu.memory_space<vmem>>, vector<1x8x9xf32>
    tpu.vector_store %arg4[%c0_18, %c0_19, %c0_20], %17 {strides = array<i32>} : memref<1x8x9xf32, #tpu.memory_space<vmem>>, vector<1x8x9xf32>,
    return
  }
  func.func @transform_0(%arg0: i32) -> (i32, i32, i32) {
    %c0_i32 = arith.constant 0 : i32
    %c0_i32_0 = arith.constant 0 : i32
    %c0_i32_1 = arith.constant 0 : i32
    return %arg0, %c0_i32, %c0_i32_0 : i32, i32, i32
  }
  func.func @transform_1(%arg0: i32) -> (i32, i32) {
    %c0_i32 = arith.constant 0 : i32
    %c0_i32_0 = arith.constant 0 : i32
    %c0_i32_1 = arith.constant 0 : i32
    return %c0_i32, %c0_i32_0 : i32, i32
  }
  func.func @transform_2(%arg0: i32) -> (i32, i32) {
    %c0_i32 = arith.constant 0 : i32
    %c0_i32_0 = arith.constant 0 : i32
    %c0_i32_1 = arith.constant 0 : i32
    return %c0_i32, %c0_i32_0 : i32, i32
  }
  func.func @transform_3(%arg0: i32) -> (i32, i32, i32) {
    %c0_i32 = arith.constant 0 : i32
    %c0_i32_0 = arith.constant 0 : i32
    %c0_i32_1 = arith.constant 0 : i32
    return %arg0, %c0_i32, %c0_i32_0 : i32, i32, i32
  }
}

</mosaic_0001>

<bundles_post_ra>
// kernel: tpu_custom_call.1
= control target key start
LH: loop header
LB: loop body
LE: loop exit
PB: predicated region body
PF: predicated region fallthrough
CT: control target
= control target key end

     0   :  { %8 = vsyncpa [#allocation4], 0  ;;  %s605_s0 = inlined_call_operand.vmem [shape: f32[2,18,8], index: 0, kind: input, shape index: {}]   ;;  %s606_s1 = inlined_call_operand.vmem [shape: f32[16,18], index: 1, kind: input, shape index: {}]   ;;  %s607_s2 = inlined_call_operand.vmem [shape: f32[8,9], index: 2, kind: input, shape index: {}]   ;;  %s608_s3 = inlined_call_operand.hbm [shape: f32[2,8,9], index: 3, kind: output, shape index: {}]  }
   0x1   :  { %10 = vsyncpa [#allocation4 + $0x1], 0  ;;  %s505_s12 = smov 0   ;;  %s507_s13 = smov 0  }
   0x2   :  { %s509_s14 = smov 0   ;;  %s511_s15 = smov 0  }
   0x3 LB: > { %s526_s16 = sadd.s32 4294967295, %s480_s15   ;;  %s351_s17 = sadd.s32 4294967294, %s480_s15   ;;  %s480_s15 = sphi %s511_s15, %s614_s15   ;;  %s476_s14 = sphi %s509_s14, %s613_s14   ;;  %s472_s13 = sphi %s507_s13, %s612_s13   ;;  %s468_s12 = sphi %s505_s12, %s611_s12  }
   0x4   : > { %s530_s18 = sadd.s32 1, %s480_s15   ;;  %s91_s19 = sadd.s32 1, %s476_s14 }
   0x5   : > { %s88_s20 = ssub.s32 %s480_s15, %s530_s18  ;;  %p101_p0 = scmp.ne.s32.totalorder %s476_s14, %s472_s13 }
   0x6   : > { %p89_p1 = scmp.eq.s32.totalorder %s88_s20, 0  ;;  %p102_p2 = scmp.eq.s32.totalorder %s526_s16, 1 }
   0x7   : > { %p107_p3 = scmp.ne.s32.totalorder %s472_s13, %s468_s12  ;;  %p108_p4 = scmp.eq.s32.totalorder %s351_s17, 1 }
   0x8   : > { %s541_s21 = scalar_select %p89_p1, %s476_s14, %s91_s19  }
   0x9   : > { %p543_p5 = por %p102_p2, %p101_p0  ;;  %p547_p6 = por %p108_p4, %p107_p3 }
   0xa   : > { %p354_p7 = scmp.ge.s32.totalorder %s480_s15, 1  ;;  %p140_p8 = scmp.lt.s32.totalorder %s480_s15, 3 }
   0xc   : > { %p141_p9 = pnand %p354_p7, %p140_p8 }
   0xd   : > { %p164_p10 = scmp.lt.s32.totalorder (!%p141_p9), %s526_s16, 1  ;;  %s483_s6 = smov (!%p141_p9), 1  }
   0xe   : > { %144 = sbr.rel (%p141_p9) target bundleno = 364 (0x16c), region = 32  ;;  %s161_s7 = sand.u32 (!%p141_p9), 1, %s472_s13  }
   0xf   : > { %s355_s8 = sshll.u32 (!%p141_p9), %s161_s7, 3  ;;  %s361_s11 = sshll.u32 (!%p141_p9), %s526_s16, 7 }
  0x10   : > { %s163_s17 = scalar_lea.vmem (!%p141_p9), [#allocation3], %s355_s8  ;;  %s290_s25 = scalar_lea.hbm (!%p141_p9), %s608_s3, %s361_s11 }
  0x11   : > { %s292_s19 = sshll.u32 (!%p141_p9), %s163_s17, 4  ;;  %s484_s28 = smov (!%p141_p9), [#allocation3]   ;;  %s293_s19 = int_to_ptr.vmem [resolvable:$true] %s292_s19 }
  0x12   : > { %s424_s29 = sshll.u32 (!%p141_p9), %s484_s28, 4  ;;  %s425_s29 = int_to_ptr.vmem [resolvable:$false] %s424_s29 }
  0x13   : > { %v169_v0 = vld [vmem:[%s606_s1] sm:$0xff]  ;;  %vm174_vm0 = vcmask 146432   ;;  %s165_s26 = scalar_select %p164_p10, %s526_s16, 1  ;;  %vm181_vm1 = vcmask 1041408   ;;  %v170_v4 = vld [vmem:[%s606_s1 + $0x8] sm:$0xff]  ;;  %vm260_vm2 = vcmask 72704  }
  0x14   : > { %375 = vmatprep.mubr.msk.f32.mxu0 %vm174_vm0, %v169_v0  ;;  %v482_v5 = vmov 0.0   ;;  %vm264_vm3 = vcmask 64512   ;;  %vm272_vm4 = vcmask 72712   ;;  %v275_v13 = vld [vmem:[%s607_s2] sm:$0xff]  ;;  %s426_s16 = scalar_lea.vmem %s425_s29, 256  ;;  %p427_p0 = scmp.lt.s32.totalorder %s293_s19, %s425_s29 }
  0x15   : > { %s378_s27 = smul.u32 24, %s165_s26  ;;  %261 = vst.msk [vmem:[#allocation2] sm:$0xff] %vm260_vm2, %v482_v5  ;;  %s279_s26 = scalar_lea.sflag [#allocation4], %s161_s7 }
  0x17   : > { %s168_s30 = scalar_lea.vmem %s605_s0, %s378_s27  ;;  %s420_s27 = scalar_lea.vmem %s293_s19, 128 }
  0x18   : > { %v173_v1 = vld [vmem:[%s168_s30 + $0x10] sm:$0x3]  ;;  %v172_v2 = vld [vmem:[%s168_s30 + $0x8] sm:$0xff]  ;;  %v171_v3 = vld [vmem:[%s168_s30] sm:$0xff]  ;;  %p421_p11 = scmp.ne.s32.totalorder %s293_s19, %s420_s27  ;;  %p428_p1 = scmp.lt.s32.totalorder %s426_s16, %s420_s27 }
  0x19   : > { %369 = vmatprep.subr.msk.mxu0 %vm181_vm1, %v173_v1 }
  0x1a   : > { %370 = vmatpush3.msk.msra.mxu0 %vm181_vm1, %v173_v1  ;;  %p422_p12 = pnand %p421_p11, %p543_p5  ;;  %p429_p2 = por %p428_p1, %p427_p0 }
  0x1b   : > { %371 = vmatprep.subr.mxu0 %v172_v2 }
  0x1c   : > { %372 = vmatpush3.msra.mxu0 %v172_v2  ;;  %v262_v7 = vld [vmem:[#allocation2] sm:$0xff]  ;;  %p423_p13 = pneg %p422_p12 }
  0x1d   : > { %373 = vmatprep.subr.mxu0 %v171_v3 }
  0x1e   : > { %374 = vmatpush3.msra.mxu0 %v171_v3  ;;  %p430_p3 = pnand %p429_p2, %p423_p13 }
  0x1f   : > { %376 = vmatmul.mubr.msk.f32.vlgmr.msra.gmra.mxu0 %vm174_vm0, %v170_v4 }
  0xdf   : > { %v377_v6 = vpop.f32.mrf.mxu0 }
  0xe0   : > { %268 = vrot.lane.b32.xlu0 %v377_v6, %s483_s6 }
  0xe1   : > { %v251_v8 = vpop.f32.mrf.mxu0 }
  0xe2   : > { %v263_v9 = vadd.f32 %v262_v7, %v251_v8 }
  0xe4   : > { %265 = vst.msk [vmem:[#allocation2] sm:$0xff] %vm264_vm3, %v263_v9 }
  0xeb   : > { %v266_v10 = vld [vmem:[#allocation2] sm:$0xff] }
 0x152   : > { %v269_v11 = vpop.permute.xlu0 %268 }
 0x153   : > { %v271_v12 = vadd.f32 %v269_v11, %v266_v10 }
 0x155   : > { %273 = vst.msk [vmem:[#allocation2] sm:$0xff] %vm272_vm4, %v271_v12 }
 0x15c   : > { %v274_v14 = vld [vmem:[#allocation2] sm:$0xff] }
 0x15d   : > { %v276_v15 = vmul.f32 %v275_v13, %v274_v14 }
 0x15f   : > { %277 = vst.msk [vmem:[%s163_s17] sm:$0xff] %vm260_vm2, %v276_v15 }
 0x160   : > { %433 = shalt.err (!%p430_p3)
}
 0x161   : > { %s434_s30 = scalar_lea.hbm %s290_s25, 128  ;;  %s438_s6 = scalar_lea.hbm %s608_s3, 256 }
 0x162   : > { %p435_p4 = scmp.ne.s32.totalorder %s290_s25, %s434_s30  ;;  %p439_p9 = scmp.lt.s32.totalorder %s290_s25, %s608_s3 }
 0x163   : > { %p440_p10 = scmp.lt.s32.totalorder %s438_s6, %s434_s30 }
 0x164   : > { %p436_p7 = pnand %p435_p4, %p543_p5 }
 0x165   : > { %p441_p11 = por %p440_p10, %p439_p9 }
 0x166   : > { %p437_p8 = pneg %p436_p7 }
 0x168   : > { %p442_p12 = pnand %p441_p11, %p437_p8 }
 0x16a   : > { %445 = shalt.err (!%p442_p12)
}
 0x16b   : > { %379 = dma.vmem_to_hbm [thread:$0]  (%p543_p5), %s293_s19, 128, %s290_s25, %s279_s26  }
 0x16c PF: > { %p385_p13 = scmp.ge.s32.totalorder %s480_s15, 2  ;;  %s304_s9 = sand.u32 1, %s468_s12  }
 0x16d   : > { %s305_s10 = scalar_lea.sflag [#allocation4], %s304_s9 }
 0x16e   : > { %p382_p0 = pnand %p385_p13, %p547_p6 }
 0x170   : > { %p383_p1 = pneg %p382_p0 }
 0x172   : > { %463 = dma.done.wait (%p383_p1), %s305_s10, 128  }
 0x173   : > { %465 = vsyncadd (%p383_p1), %s305_s10, 4294967168  ;;  %p13_p2 = scmp.ge.s32.totalorder %s530_s18, 4   ;;  %s611_s12 = smov %s472_s13 }
 0x174   : > { %s612_s13 = smov %s476_s14  ;;  %s613_s14 = smov %s541_s21 }
 0x175   : > { %s614_s15 = smov %s530_s18  ;;  %15 = sbr.rel (!%p13_p2) target bundleno = 3 (0x3), region = 67 }
 0x17a   :  { %310 = vsyncpa [#allocation4], 1 }
 0x17b   :  { %312 = vsyncpa [#allocation4 + $0x1], 1 }

</bundles_post_ra>
